<compile_context>
chip_gen: v7x
topology: tpu7x:2x2x1
jax: 0.10.0
libtpu: 0.0.40
codegen_flags: <defaults>
</compile_context>

<pallas_src>
import jax
import jax.numpy as jnp
from jax.experimental import pallas as pl
from jax.experimental.pallas import tpu as pltpu


# ------------------------------- utilities --------------------------------- #
def _round_up(n, m):
    return ((n + m - 1) // m) * m


# ----------------------------- Pallas kernel ------------------------------- #
def _relukan_fused_kernel(*refs):
    """Fused ReLUKAN forward: every layer inside one kernel invocation.

    refs = (x_ref, [plow_ref, phigh_ref, w_ref, b_ref] * L, o_ref)
      x_ref : (TB, in_k0)      f32 batch tile of the (lane-padded) network input
      plow  : (1, gk*in_k)     f32 lower phases, j-major flatten (padded = 0)
      phigh : (1, gk*in_k)     f32 upper phases (padded = 0)
      w     : (gk*in_k, out_k) bf16 conv weight re-paired per basis, r^2 folded
      b     : (1, out_k)       f32 bias (padded lanes = 0)
      o_ref : (TB, out_k_last) f32 lane-dense output tile
    """
    x_ref, o_ref = refs[0], refs[-1]
    param_refs = refs[1:-1]
    assert len(param_refs) % 4 == 0
    num_layers = len(param_refs) // 4

    h = x_ref[...]                                       # (TB, in_k) f32
    for layer in range(num_layers):                      # static unroll, few layers
        plow_ref, phigh_ref, w_ref, b_ref = param_refs[4 * layer: 4 * layer + 4]
        K = plow_ref.shape[-1]                           # gk * in_k
        in_k = h.shape[-1]
        assert K % in_k == 0, (K, in_k)
        gk = K // in_k
        # Replicate activations gk times along the lane axis (j-major layout:
        # K index = j*in_k + i).  in_k is a multiple of 128 -> pure vreg copies.
        h_rep = h if gk == 1 else jnp.concatenate([h] * gk, axis=-1)
        # One fused elementwise pass on (TB, gk*in_k); phases broadcast from a
        # single sublane row.  The scale r^2 is folded into the weights.
        y = (jnp.maximum(h_rep - plow_ref[...], 0.0) *
             jnp.maximum(phigh_ref[...] - h_rep, 0.0))
        y = y * y
        # One big-K MXU matmul per layer: bf16 operands, f32 accumulation.
        h = jnp.dot(y.astype(jnp.bfloat16), w_ref[...],
                    preferred_element_type=jnp.float32) + b_ref[...]
    o_ref[...] = h


# ------------------------- parameter pre-processing ------------------------ #
def prepare_relukan_params(params_raw, g, k, lane_align=128):
    """One-time prep: flatten per-basis weights/phases to a fused-K layout,
    fold r^2, cast weights to bf16, zero-pad widths to lane multiples.

    Input per layer:  plow (in, gk), phigh (in, gk), w (out, 1, gk, in), b (out,)
    Output per layer: plow_f (1, gk*in_k), phigh_f (1, gk*in_k),
                      w_flat (gk*in_k, out_k) bf16, b_p (1, out_k)
      in_k  = round_up(in, 128) for layer 0 (wrapper pads x), else previous out_k
      out_k = round_up(out, lane_align)
    Padded input features carry zero phases and zero weight rows; padded output
    columns carry zero weight columns and zero bias -> padding is exact.
    """
    # TODO(synk): on v6e/v7x, lane_align=256 for wide layers would fill the
    # 256x256 MXU better; kept at 128 here (optimal on v5e, exact everywhere).
    gk = g + k
    r2 = (4.0 * g * g / ((k + 1.0) * (k + 1.0))) ** 2
    prepared = []
    prev_out_k = None
    for l, (plow, phigh, w, b) in enumerate(params_raw):
        in_real, gk_chk = plow.shape
        assert gk_chk == gk
        out_real = w.shape[0]
        in_k = _round_up(in_real, 128) if l == 0 else prev_out_k
        assert in_k >= in_real
        out_k = _round_up(out_real, lane_align)
        K = gk * in_k

        plow_g = jnp.zeros((gk, in_k), jnp.float32)
        plow_g = plow_g.at[:, :in_real].set(plow.astype(jnp.float32).T)
        phigh_g = jnp.zeros((gk, in_k), jnp.float32)
        phigh_g = phigh_g.at[:, :in_real].set(phigh.astype(jnp.float32).T)
        plow_f = plow_g.reshape(1, K)
        phigh_f = phigh_g.reshape(1, K)

        # torch reshapes y (B, in, gk) -> (B, 1, gk, in) by memory reinterpretation,
        # so basis (i, j) pairs with conv-weight flat index p = i*gk + j of the
        # row-major (gk, in) flatten: w3[o, i, j] := w.reshape(out, gk*in)[o, i*gk+j]
        # which (row-major) is simply w.reshape(out, in, gk).
        w3 = w.astype(jnp.float32).reshape(out_real, in_real, gk)
        w_full = jnp.zeros((gk, in_k, out_k), jnp.float32)
        w_full = w_full.at[:, :in_real, :out_real].set(
            jnp.transpose(w3, (2, 1, 0)) * r2)
        w_flat = w_full.reshape(K, out_k).astype(jnp.bfloat16)

        b_p = jnp.zeros((1, out_k), jnp.float32)
        b_p = b_p.at[0, :out_real].set(b.astype(jnp.float32))

        prepared.append((plow_f, phigh_f, w_flat, b_p))
        prev_out_k = out_k
    return prepared


# ------------------------------ tile planning ------------------------------- #
def _plan(B, in_k0, prepared, *, vmem_budget=44 << 20, max_tb=1024):
    """Choose batch tile / grid / vmem limit from the FULL VMEM footprint:
    resident (single-buffered) parameters + per-row activation working set
    + double-buffered x/out tiles."""
    param_bytes = 0
    act_worst = 0
    in_k = in_k0
    for plow_f, _phigh_f, w_flat, b_p in prepared:
        K = plow_f.shape[-1]
        out_k = b_p.shape[-1]
        param_bytes += 2 * 4 * K + 2 * K * out_k + 4 * out_k   # f32 phases, bf16 w, f32 b
        act_worst = max(act_worst, 4 * in_k + 16 * K + 8 * out_k)  # h, reps, temps, acc
        in_k = out_k
    out_k_last = prepared[-1][3].shape[-1]
    io_bytes = 8 * (in_k0 + out_k_last)                # double-buffered x / out tiles
    per_row = act_worst + io_bytes

    if param_bytes + 8 * per_row > vmem_budget:
        # TODO(synk): stream large weight slabs from HBM (memory_space=pl.ANY +
        # pltpu.emit_pipeline) when resident parameters exceed the per-core VMEM
        # budget (relevant for very wide layers on v7x's 64 MiB/TC).
        raise ValueError("resident ReLUKAN parameters exceed the VMEM budget")

    tb = (vmem_budget - param_bytes) // per_row
    tb = max(8, min(max_tb, (tb // 8) * 8))
    tb = min(tb, _round_up(B, 8))
    # Prefer >= 2 grid steps so both v7x TensorCores get work (no-op on v5e/v6e).
    while _round_up(B, tb) // tb < 2 and tb > 8:
        tb = max(8, _round_up(tb // 2, 8))
    b_pad = _round_up(B, tb)
    vmem_limit = int(min(56 << 20,
                         max(32 << 20, param_bytes + tb * per_row + (4 << 20))))
    return tb, b_pad, vmem_limit


# --------------------------------- wrapper --------------------------------- #
def relukan_forward(x, prepared, out_features):
    """Run the fused ReLUKAN network. `prepared` comes from prepare_relukan_params."""
    B, in0 = x.shape
    in_k0 = _round_up(in0, 128)
    assert prepared[0][0].shape[-1] % in_k0 == 0
    out_k_last = prepared[-1][3].shape[-1]

    TB, B_pad, vmem_limit = _plan(B, in_k0, prepared)
    grid = (B_pad // TB,)

    # Zero-pad batch rows (dropped at the end) and input lanes (exact: the
    # padded features carry zero phases and zero weight rows).
    x_p = jnp.zeros((B_pad, in_k0), jnp.float32).at[:B, :in0].set(
        x.astype(jnp.float32))

    operands = [x_p] + [arr for layer_arrs in prepared for arr in layer_arrs]

    def build(single_buffer_params):
        in_specs = [pl.BlockSpec((TB, in_k0), lambda i: (i, 0))]
        for layer_arrs in prepared:
            for arr in layer_arrs:
                kwargs = {}
                if single_buffer_params:
                    # Invariant blocks (constant index map): no double buffering.
                    kwargs["pipeline_mode"] = pl.Buffered(1)
                in_specs.append(
                    pl.BlockSpec(arr.shape, lambda i, nd=arr.ndim: (0,) * nd,
                                 **kwargs))
        return pl.pallas_call(
            _relukan_fused_kernel,
            out_shape=jax.ShapeDtypeStruct((B_pad, out_k_last), jnp.float32),
            grid=grid,
            in_specs=in_specs,
            out_specs=pl.BlockSpec((TB, out_k_last), lambda i: (i, 0)),
            compiler_params=pltpu.CompilerParams(
                dimension_semantics=("parallel",),
                vmem_limit_bytes=vmem_limit),
        )

    try:
        out = build(True)(*operands)
    except Exception:
        # Fallback if pipeline_mode=pl.Buffered(1) is unsupported on this jax
        # version: default (double) buffering, still well within vmem_limit.
        out = build(False)(*operands)
    return out[:B, :out_features]


# ---------------------- pure-JAX reference (PyTorch math) ------------------ #
def relukan_forward_ref(x, params_raw, g, k):
    gk = g + k
    r = 4.0 * g * g / ((k + 1.0) * (k + 1.0))
    for plow, phigh, w, b in params_raw:
        B, in_features = x.shape
        xe = x[..., None]                                          # (B, in, 1)
        y = jnp.maximum(xe - plow, 0.0) * jnp.maximum(phigh - xe, 0.0) * r
        y = y * y                                                  # (B, in, gk)
        y = y.reshape(B, 1, gk, in_features)                       # NCHW reinterpret
        x = jnp.einsum("bchw,ochw->bo", y, w) + b                  # full-extent conv
    return x


# ---------------------------- deterministic init ---------------------------- #
def init_relukan_params(key, layers_hidden, g, k):
    gk = g + k
    params = []
    for idx, (in_f, out_f) in enumerate(zip(layers_hidden[:-1], layers_hidden[1:])):
        phase_low = jnp.broadcast_to(
            jnp.arange(-k, g, dtype=jnp.float32) / g, (in_f, gk))
        phase_high = phase_low + (k + 1.0) / g
        fan_in = 1 * gk * in_f
        bound = 1.0 / jnp.sqrt(jnp.float32(fan_in))
        kw, kb = jax.random.split(jax.random.fold_in(key, idx))
        w = jax.random.uniform(
            kw, (out_f, 1, gk, in_f), jnp.float32, minval=-bound, maxval=bound)
        b = jax.random.uniform(kb, (out_f,), jnp.float32, minval=-bound, maxval=bound)
        params.append((phase_low, phase_high, w, b))
    return params


def _assert_close(out, ref, tag, tol=3e-2):
    # bf16 MXU operands with f32 accumulation: check error relative to scale.
    denom = float(jnp.max(jnp.abs(ref))) + 1e-8
    err = float(jnp.max(jnp.abs(out - ref))) / denom
    assert err < tol, f"{tag}: relative error {err:.4e} (tol {tol})"


# ----------------------------------- main ----------------------------------- #
if __name__ == "__main__":
    key = jax.random.PRNGKey(0)

    # Config 1: ReLUKAN(layers_hidden=[16, 32, 8], g=1, k=1), B=8
    layers_hidden = [16, 32, 8]
    g, k = 1, 1
    B = 8
    params_raw = init_relukan_params(key, layers_hidden, g, k)
    prepared = prepare_relukan_params(params_raw, g, k)
    x = jax.random.normal(
        jax.random.fold_in(key, 1234), (B, layers_hidden[0]), dtype=jnp.float32)
    out = jax.block_until_ready(relukan_forward(x, prepared, layers_hidden[-1]))
    ref = relukan_forward_ref(x, params_raw, g, k)
    assert out.shape == (B, layers_hidden[-1]), out.shape
    _assert_close(out, ref, "cfg1")

    # Config 2: exercises batch padding, gk=8, odd feature widths, 2 grid tiles.
    layers_hidden2 = [10, 40, 6]
    g2, k2 = 5, 3
    B2 = 12
    key2 = jax.random.PRNGKey(0)
    params_raw2 = init_relukan_params(key2, layers_hidden2, g2, k2)
    prepared2 = prepare_relukan_params(params_raw2, g2, k2)
    x2 = jax.random.normal(
        jax.random.fold_in(key2, 77), (B2, layers_hidden2[0]), dtype=jnp.float32)
    out2 = jax.block_until_ready(relukan_forward(x2, prepared2, layers_hidden2[-1]))
    ref2 = relukan_forward_ref(x2, params_raw2, g2, k2)
    assert out2.shape == (B2, layers_hidden2[-1]), out2.shape
    _assert_close(out2, ref2, "cfg2")

    print("KERNEL_OK")
</pallas_src>

<mosaic_0001>
module attributes {stable_mosaic.version = 11 : i64} {
  func.func @_relukan_fused_kernel(%arg0: i32, %arg1: memref<8x128xf32, #tpu.memory_space<vmem>>, %arg2: memref<1x256xf32, #tpu.memory_space<vmem>>, %arg3: memref<1x256xf32, #tpu.memory_space<vmem>>, %arg4: memref<256x128xbf16, #tpu.memory_space<vmem>>, %arg5: memref<1x128xf32, #tpu.memory_space<vmem>>, %arg6: memref<1x256xf32, #tpu.memory_space<vmem>>, %arg7: memref<1x256xf32, #tpu.memory_space<vmem>>, %arg8: memref<256x128xbf16, #tpu.memory_space<vmem>>, %arg9: memref<1x128xf32, #tpu.memory_space<vmem>>, %arg10: memref<8x128xf32, #tpu.memory_space<vmem>>) attributes {dimension_semantics = [#tpu.dimension_semantics<parallel>], iteration_bounds = array<i64: 1>, scalar_prefetch = 0 : i64, scratch_operands = 0 : i64, tpu.core_type = #tpu.core_type<tc>, window_params = [{transform_indices = @transform_0, window_bounds = array<i64: 8, 128>}, {pipeline_mode = #tpu.pipeline_mode<synchronous>, transform_indices = @transform_1, window_bounds = array<i64: 1, 256>}, {pipeline_mode = #tpu.pipeline_mode<synchronous>, transform_indices = @transform_2, window_bounds = array<i64: 1, 256>}, {pipeline_mode = #tpu.pipeline_mode<synchronous>, transform_indices = @transform_3, window_bounds = array<i64: 256, 128>}, {pipeline_mode = #tpu.pipeline_mode<synchronous>, transform_indices = @transform_4, window_bounds = array<i64: 1, 128>}, {pipeline_mode = #tpu.pipeline_mode<synchronous>, transform_indices = @transform_5, window_bounds = array<i64: 1, 256>}, {pipeline_mode = #tpu.pipeline_mode<synchronous>, transform_indices = @transform_6, window_bounds = array<i64: 1, 256>}, {pipeline_mode = #tpu.pipeline_mode<synchronous>, transform_indices = @transform_7, window_bounds = array<i64: 256, 128>}, {pipeline_mode = #tpu.pipeline_mode<synchronous>, transform_indices = @transform_8, window_bounds = array<i64: 1, 128>}, {transform_indices = @transform_9, window_bounds = array<i64: 8, 128>}]} {
    %c0 = arith.constant 0 : index
    %c0_0 = arith.constant 0 : index
    %0 = vector.load %arg1[%c0, %c0_0] : memref<8x128xf32, #tpu.memory_space<vmem>>, vector<8x128xf32>
    %1 = tpu.concatenate %0, %0 in 1 : vector<8x128xf32>, vector<8x128xf32> -> vector<8x256xf32>
    %c0_1 = arith.constant 0 : index
    %c0_2 = arith.constant 0 : index
    %2 = vector.load %arg2[%c0_1, %c0_2] : memref<1x256xf32, #tpu.memory_space<vmem>>, vector<1x256xf32>
    %3 = vector.broadcast %2 : vector<1x256xf32> to vector<8x256xf32>
    %4 = arith.subf %1, %3 : vector<8x256xf32>
    %cst = arith.constant 0.000000e+00 : f32
    %5 = vector.broadcast %cst : f32 to vector<8x256xf32>
    %6 = arith.maximumf %4, %5 : vector<8x256xf32>
    %c0_3 = arith.constant 0 : index
    %c0_4 = arith.constant 0 : index
    %7 = vector.load %arg3[%c0_3, %c0_4] : memref<1x256xf32, #tpu.memory_space<vmem>>, vector<1x256xf32>
    %8 = vector.broadcast %7 : vector<1x256xf32> to vector<8x256xf32>
    %9 = arith.subf %8, %1 : vector<8x256xf32>
    %cst_5 = arith.constant 0.000000e+00 : f32
    %10 = vector.broadcast %cst_5 : f32 to vector<8x256xf32>
    %11 = arith.maximumf %9, %10 : vector<8x256xf32>
    %12 = arith.mulf %6, %11 : vector<8x256xf32>
    %13 = arith.mulf %12, %12 : vector<8x256xf32>
    %14 = arith.truncf %13 : vector<8x256xf32> to vector<8x256xbf16>
    %c0_6 = arith.constant 0 : index
    %c0_7 = arith.constant 0 : index
    %15 = vector.load %arg4[%c0_6, %c0_7] : memref<256x128xbf16, #tpu.memory_space<vmem>>, vector<256x128xbf16>
    %cst_8 = arith.constant dense<0.000000e+00> : vector<8x128xf32>
    %16 = tpu.matmul %14, %15, %cst_8 {dimension_numbers = #tpu.dot_dimension_numbers<[1], [0], [0], [1], [0, 0, 1, 1], [], []>} : vector<8x256xbf16>, vector<256x128xbf16>, vector<8x128xf32> -> vector<8x128xf32>
    %c0_9 = arith.constant 0 : index
    %c0_10 = arith.constant 0 : index
    %17 = vector.load %arg5[%c0_9, %c0_10] : memref<1x128xf32, #tpu.memory_space<vmem>>, vector<1x128xf32>
    %18 = vector.broadcast %17 : vector<1x128xf32> to vector<8x128xf32>
    %19 = arith.addf %16, %18 : vector<8x128xf32>
    %20 = tpu.concatenate %19, %19 in 1 : vector<8x128xf32>, vector<8x128xf32> -> vector<8x256xf32>
    %c0_11 = arith.constant 0 : index
    %c0_12 = arith.constant 0 : index
    %21 = vector.load %arg6[%c0_11, %c0_12] : memref<1x256xf32, #tpu.memory_space<vmem>>, vector<1x256xf32>
    %22 = vector.broadcast %21 : vector<1x256xf32> to vector<8x256xf32>
    %23 = arith.subf %20, %22 : vector<8x256xf32>
    %cst_13 = arith.constant 0.000000e+00 : f32
    %24 = vector.broadcast %cst_13 : f32 to vector<8x256xf32>
    %25 = arith.maximumf %23, %24 : vector<8x256xf32>
    %c0_14 = arith.constant 0 : index
    %c0_15 = arith.constant 0 : index
    %26 = vector.load %arg7[%c0_14, %c0_15] : memref<1x256xf32, #tpu.memory_space<vmem>>, vector<1x256xf32>
    %27 = vector.broadcast %26 : vector<1x256xf32> to vector<8x256xf32>
    %28 = arith.subf %27, %20 : vector<8x256xf32>
    %cst_16 = arith.constant 0.000000e+00 : f32
    %29 = vector.broadcast %cst_16 : f32 to vector<8x256xf32>
    %30 = arith.maximumf %28, %29 : vector<8x256xf32>
    %31 = arith.mulf %25, %30 : vector<8x256xf32>
    %32 = arith.mulf %31, %31 : vector<8x256xf32>
    %33 = arith.truncf %32 : vector<8x256xf32> to vector<8x256xbf16>
    %c0_17 = arith.constant 0 : index
    %c0_18 = arith.constant 0 : index
    %34 = vector.load %arg8[%c0_17, %c0_18] : memref<256x128xbf16, #tpu.memory_space<vmem>>, vector<256x128xbf16>
    %cst_19 = arith.constant dense<0.000000e+00> : vector<8x128xf32>
    %35 = tpu.matmul %33, %34, %cst_19 {dimension_numbers = #tpu.dot_dimension_numbers<[1], [0], [0], [1], [0, 0, 1, 1], [], []>} : vector<8x256xbf16>, vector<256x128xbf16>, vector<8x128xf32> -> vector<8x128xf32>
    %c0_20 = arith.constant 0 : index
    %c0_21 = arith.constant 0 : index
    %36 = vector.load %arg9[%c0_20, %c0_21] : memref<1x128xf32, #tpu.memory_space<vmem>>, vector<1x128xf32>
    %37 = vector.broadcast %36 : vector<1x128xf32> to vector<8x128xf32>
    %38 = arith.addf %35, %37 : vector<8x128xf32>
    %c0_22 = arith.constant 0 : index
    %c0_23 = arith.constant 0 : index
    %39 = vector.load %arg10[%c0_22, %c0_23] : memref<8x128xf32, #tpu.memory_space<vmem>>, vector<8x128xf32>
    tpu.vector_store %arg10[%c0_22, %c0_23], %38 {strides = array<i32>} : memref<8x128xf32, #tpu.memory_space<vmem>>, vector<8x128xf32>,
    return
  }
  func.func @transform_0(%arg0: i32) -> (i32, i32) {
    %c0_i32 = arith.constant 0 : i32
    %c0_i32_0 = arith.constant 0 : i32
    return %arg0, %c0_i32 : i32, i32
  }
  func.func @transform_1(%arg0: i32) -> (i32, i32) {
    %c0_i32 = arith.constant 0 : i32
    %c0_i32_0 = arith.constant 0 : i32
    %c0_i32_1 = arith.constant 0 : i32
    return %c0_i32, %c0_i32_0 : i32, i32
  }
  func.func @transform_2(%arg0: i32) -> (i32, i32) {
    %c0_i32 = arith.constant 0 : i32
    %c0_i32_0 = arith.constant 0 : i32
    %c0_i32_1 = arith.constant 0 : i32
    return %c0_i32, %c0_i32_0 : i32, i32
  }
  func.func @transform_3(%arg0: i32) -> (i32, i32) {
    %c0_i32 = arith.constant 0 : i32
    %c0_i32_0 = arith.constant 0 : i32
    %c0_i32_1 = arith.constant 0 : i32
    return %c0_i32, %c0_i32_0 : i32, i32
  }
  func.func @transform_4(%arg0: i32) -> (i32, i32) {
    %c0_i32 = arith.constant 0 : i32
    %c0_i32_0 = arith.constant 0 : i32
    %c0_i32_1 = arith.constant 0 : i32
    return %c0_i32, %c0_i32_0 : i32, i32
  }
  func.func @transform_5(%arg0: i32) -> (i32, i32) {
    %c0_i32 = arith.constant 0 : i32
    %c0_i32_0 = arith.constant 0 : i32
    %c0_i32_1 = arith.constant 0 : i32
    return %c0_i32, %c0_i32_0 : i32, i32
  }
  func.func @transform_6(%arg0: i32) -> (i32, i32) {
    %c0_i32 = arith.constant 0 : i32
    %c0_i32_0 = arith.constant 0 : i32
    %c0_i32_1 = arith.constant 0 : i32
    return %c0_i32, %c0_i32_0 : i32, i32
  }
  func.func @transform_7(%arg0: i32) -> (i32, i32) {
    %c0_i32 = arith.constant 0 : i32
    %c0_i32_0 = arith.constant 0 : i32
    %c0_i32_1 = arith.constant 0 : i32
    return %c0_i32, %c0_i32_0 : i32, i32
  }
  func.func @transform_8(%arg0: i32) -> (i32, i32) {
    %c0_i32 = arith.constant 0 : i32
    %c0_i32_0 = arith.constant 0 : i32
    %c0_i32_1 = arith.constant 0 : i32
    return %c0_i32, %c0_i32_0 : i32, i32
  }
  func.func @transform_9(%arg0: i32) -> (i32, i32) {
    %c0_i32 = arith.constant 0 : i32
    %c0_i32_0 = arith.constant 0 : i32
    return %arg0, %c0_i32 : i32, i32
  }
}

module attributes {stable_mosaic.version = 11 : i64} {
  func.func @_relukan_fused_kernel(%arg0: i32, %arg1: memref<8x128xf32, #tpu.memory_space<vmem>>, %arg2: memref<1x256xf32, #tpu.memory_space<vmem>>, %arg3: memref<1x256xf32, #tpu.memory_space<vmem>>, %arg4: memref<256x128xbf16, #tpu.memory_space<vmem>>, %arg5: memref<1x128xf32, #tpu.memory_space<vmem>>, %arg6: memref<1x256xf32, #tpu.memory_space<vmem>>, %arg7: memref<1x256xf32, #tpu.memory_space<vmem>>, %arg8: memref<256x128xbf16, #tpu.memory_space<vmem>>, %arg9: memref<1x128xf32, #tpu.memory_space<vmem>>, %arg10: memref<8x128xf32, #tpu.memory_space<vmem>>) attributes {dimension_semantics = [#tpu.dimension_semantics<parallel>], iteration_bounds = array<i64: 1>, scalar_prefetch = 0 : i64, scratch_operands = 0 : i64, tpu.core_type = #tpu.core_type<tc>, window_params = [{transform_indices = @transform_0, window_bounds = array<i64: 8, 128>}, {pipeline_mode = #tpu.pipeline_mode<synchronous>, transform_indices = @transform_1, window_bounds = array<i64: 1, 256>}, {pipeline_mode = #tpu.pipeline_mode<synchronous>, transform_indices = @transform_2, window_bounds = array<i64: 1, 256>}, {pipeline_mode = #tpu.pipeline_mode<synchronous>, transform_indices = @transform_3, window_bounds = array<i64: 256, 128>}, {pipeline_mode = #tpu.pipeline_mode<synchronous>, transform_indices = @transform_4, window_bounds = array<i64: 1, 128>}, {pipeline_mode = #tpu.pipeline_mode<synchronous>, transform_indices = @transform_5, window_bounds = array<i64: 1, 256>}, {pipeline_mode = #tpu.pipeline_mode<synchronous>, transform_indices = @transform_6, window_bounds = array<i64: 1, 256>}, {pipeline_mode = #tpu.pipeline_mode<synchronous>, transform_indices = @transform_7, window_bounds = array<i64: 256, 128>}, {pipeline_mode = #tpu.pipeline_mode<synchronous>, transform_indices = @transform_8, window_bounds = array<i64: 1, 128>}, {transform_indices = @transform_9, window_bounds = array<i64: 8, 128>}]} {
    %c0 = arith.constant 0 : index
    %c0_0 = arith.constant 0 : index
    %0 = vector.load %arg1[%c0, %c0_0] : memref<8x128xf32, #tpu.memory_space<vmem>>, vector<8x128xf32>
    %1 = tpu.concatenate %0, %0 in 1 : vector<8x128xf32>, vector<8x128xf32> -> vector<8x256xf32>
    %c0_1 = arith.constant 0 : index
    %c0_2 = arith.constant 0 : index
    %2 = vector.load %arg2[%c0_1, %c0_2] : memref<1x256xf32, #tpu.memory_space<vmem>>, vector<1x256xf32>
    %3 = vector.broadcast %2 : vector<1x256xf32> to vector<8x256xf32>
    %4 = arith.subf %1, %3 : vector<8x256xf32>
    %cst = arith.constant 0.000000e+00 : f32
    %5 = vector.broadcast %cst : f32 to vector<8x256xf32>
    %6 = arith.maximumf %4, %5 : vector<8x256xf32>
    %c0_3 = arith.constant 0 : index
    %c0_4 = arith.constant 0 : index
    %7 = vector.load %arg3[%c0_3, %c0_4] : memref<1x256xf32, #tpu.memory_space<vmem>>, vector<1x256xf32>
    %8 = vector.broadcast %7 : vector<1x256xf32> to vector<8x256xf32>
    %9 = arith.subf %8, %1 : vector<8x256xf32>
    %cst_5 = arith.constant 0.000000e+00 : f32
    %10 = vector.broadcast %cst_5 : f32 to vector<8x256xf32>
    %11 = arith.maximumf %9, %10 : vector<8x256xf32>
    %12 = arith.mulf %6, %11 : vector<8x256xf32>
    %13 = arith.mulf %12, %12 : vector<8x256xf32>
    %14 = arith.truncf %13 : vector<8x256xf32> to vector<8x256xbf16>
    %c0_6 = arith.constant 0 : index
    %c0_7 = arith.constant 0 : index
    %15 = vector.load %arg4[%c0_6, %c0_7] : memref<256x128xbf16, #tpu.memory_space<vmem>>, vector<256x128xbf16>
    %cst_8 = arith.constant dense<0.000000e+00> : vector<8x128xf32>
    %16 = tpu.matmul %14, %15, %cst_8 {dimension_numbers = #tpu.dot_dimension_numbers<[1], [0], [0], [1], [0, 0, 1, 1], [], []>} : vector<8x256xbf16>, vector<256x128xbf16>, vector<8x128xf32> -> vector<8x128xf32>
    %c0_9 = arith.constant 0 : index
    %c0_10 = arith.constant 0 : index
    %17 = vector.load %arg5[%c0_9, %c0_10] : memref<1x128xf32, #tpu.memory_space<vmem>>, vector<1x128xf32>
    %18 = vector.broadcast %17 : vector<1x128xf32> to vector<8x128xf32>
    %19 = arith.addf %16, %18 : vector<8x128xf32>
    %20 = tpu.concatenate %19, %19 in 1 : vector<8x128xf32>, vector<8x128xf32> -> vector<8x256xf32>
    %c0_11 = arith.constant 0 : index
    %c0_12 = arith.constant 0 : index
    %21 = vector.load %arg6[%c0_11, %c0_12] : memref<1x256xf32, #tpu.memory_space<vmem>>, vector<1x256xf32>
    %22 = vector.broadcast %21 : vector<1x256xf32> to vector<8x256xf32>
    %23 = arith.subf %20, %22 : vector<8x256xf32>
    %cst_13 = arith.constant 0.000000e+00 : f32
    %24 = vector.broadcast %cst_13 : f32 to vector<8x256xf32>
    %25 = arith.maximumf %23, %24 : vector<8x256xf32>
    %c0_14 = arith.constant 0 : index
    %c0_15 = arith.constant 0 : index
    %26 = vector.load %arg7[%c0_14, %c0_15] : memref<1x256xf32, #tpu.memory_space<vmem>>, vector<1x256xf32>
    %27 = vector.broadcast %26 : vector<1x256xf32> to vector<8x256xf32>
    %28 = arith.subf %27, %20 : vector<8x256xf32>
    %cst_16 = arith.constant 0.000000e+00 : f32
    %29 = vector.broadcast %cst_16 : f32 to vector<8x256xf32>
    %30 = arith.maximumf %28, %29 : vector<8x256xf32>
    %31 = arith.mulf %25, %30 : vector<8x256xf32>
    %32 = arith.mulf %31, %31 : vector<8x256xf32>
    %33 = arith.truncf %32 : vector<8x256xf32> to vector<8x256xbf16>
    %c0_17 = arith.constant 0 : index
    %c0_18 = arith.constant 0 : index
    %34 = vector.load %arg8[%c0_17, %c0_18] : memref<256x128xbf16, #tpu.memory_space<vmem>>, vector<256x128xbf16>
    %cst_19 = arith.constant dense<0.000000e+00> : vector<8x128xf32>
    %35 = tpu.matmul %33, %34, %cst_19 {dimension_numbers = #tpu.dot_dimension_numbers<[1], [0], [0], [1], [0, 0, 1, 1], [], []>} : vector<8x256xbf16>, vector<256x128xbf16>, vector<8x128xf32> -> vector<8x128xf32>
    %c0_20 = arith.constant 0 : index
    %c0_21 = arith.constant 0 : index
    %36 = vector.load %arg9[%c0_20, %c0_21] : memref<1x128xf32, #tpu.memory_space<vmem>>, vector<1x128xf32>
    %37 = vector.broadcast %36 : vector<1x128xf32> to vector<8x128xf32>
    %38 = arith.addf %35, %37 : vector<8x128xf32>
    %c0_22 = arith.constant 0 : index
    %c0_23 = arith.constant 0 : index
    %39 = vector.load %arg10[%c0_22, %c0_23] : memref<8x128xf32, #tpu.memory_space<vmem>>, vector<8x128xf32>
    tpu.vector_store %arg10[%c0_22, %c0_23], %38 {strides = array<i32>} : memref<8x128xf32, #tpu.memory_space<vmem>>, vector<8x128xf32>,
    return
  }
  func.func @transform_0(%arg0: i32) -> (i32, i32) {
    %c0_i32 = arith.constant 0 : i32
    %c0_i32_0 = arith.constant 0 : i32
    return %arg0, %c0_i32 : i32, i32
  }
  func.func @transform_1(%arg0: i32) -> (i32, i32) {
    %c0_i32 = arith.constant 0 : i32
    %c0_i32_0 = arith.constant 0 : i32
    %c0_i32_1 = arith.constant 0 : i32
    return %c0_i32, %c0_i32_0 : i32, i32
  }
  func.func @transform_2(%arg0: i32) -> (i32, i32) {
    %c0_i32 = arith.constant 0 : i32
    %c0_i32_0 = arith.constant 0 : i32
    %c0_i32_1 = arith.constant 0 : i32
    return %c0_i32, %c0_i32_0 : i32, i32
  }
  func.func @transform_3(%arg0: i32) -> (i32, i32) {
    %c0_i32 = arith.constant 0 : i32
    %c0_i32_0 = arith.constant 0 : i32
    %c0_i32_1 = arith.constant 0 : i32
    return %c0_i32, %c0_i32_0 : i32, i32
  }
  func.func @transform_4(%arg0: i32) -> (i32, i32) {
    %c0_i32 = arith.constant 0 : i32
    %c0_i32_0 = arith.constant 0 : i32
    %c0_i32_1 = arith.constant 0 : i32
    return %c0_i32, %c0_i32_0 : i32, i32
  }
  func.func @transform_5(%arg0: i32) -> (i32, i32) {
    %c0_i32 = arith.constant 0 : i32
    %c0_i32_0 = arith.constant 0 : i32
    %c0_i32_1 = arith.constant 0 : i32
    return %c0_i32, %c0_i32_0 : i32, i32
  }
  func.func @transform_6(%arg0: i32) -> (i32, i32) {
    %c0_i32 = arith.constant 0 : i32
    %c0_i32_0 = arith.constant 0 : i32
    %c0_i32_1 = arith.constant 0 : i32
    return %c0_i32, %c0_i32_0 : i32, i32
  }
  func.func @transform_7(%arg0: i32) -> (i32, i32) {
    %c0_i32 = arith.constant 0 : i32
    %c0_i32_0 = arith.constant 0 : i32
    %c0_i32_1 = arith.constant 0 : i32
    return %c0_i32, %c0_i32_0 : i32, i32
  }
  func.func @transform_8(%arg0: i32) -> (i32, i32) {
    %c0_i32 = arith.constant 0 : i32
    %c0_i32_0 = arith.constant 0 : i32
    %c0_i32_1 = arith.constant 0 : i32
    return %c0_i32, %c0_i32_0 : i32, i32
  }
  func.func @transform_9(%arg0: i32) -> (i32, i32) {
    %c0_i32 = arith.constant 0 : i32
    %c0_i32_0 = arith.constant 0 : i32
    return %arg0, %c0_i32 : i32, i32
  }
}

</mosaic_0001>

<bundles_post_ra>
// kernel: tpu_custom_call.1
= control target key start
LH: loop header
LB: loop body
LE: loop exit
PB: predicated region body
PF: predicated region fallthrough
CT: control target
= control target key end

     0   :  { %14 = vsyncpa [#allocation3], 0  ;;  %s867_s0 = inlined_call_operand.hbm [shape: f32[8,128], index: 0, kind: input, shape index: {}]   ;;  %s868_s1 = inlined_call_operand.vmem [shape: f32[1,256], index: 1, kind: input, shape index: {}]   ;;  %s869_s2 = inlined_call_operand.vmem [shape: f32[1,256], index: 2, kind: input, shape index: {}]   ;;  %s870_s3 = inlined_call_operand.hbm [shape: bf16[256,128], index: 3, kind: input, shape index: {}]   ;;  %s871_s4 = inlined_call_operand.vmem [shape: f32[1,128], index: 4, kind: input, shape index: {}]   ;;  %s872_s5 = inlined_call_operand.vmem [shape: f32[1,256], index: 5, kind: input, shape index: {}]   ;;  %s873_s6 = inlined_call_operand.vmem [shape: f32[1,256], index: 6, kind: input, shape index: {}]   ;;  %s874_s7 = inlined_call_operand.hbm [shape: bf16[256,128], index: 7, kind: input, shape index: {}]   ;;  %s875_s8 = inlined_call_operand.vmem [shape: f32[1,128], index: 8, kind: input, shape index: {}]   ;;  %s876_s9 = inlined_call_operand.hbm [shape: f32[8,128], index: 9, kind: output, shape index: {}]  }
   0x1   :  { %15 = vsyncpa [#allocation6], 0 }
   0x2   :  { %16 = vsyncpa [#allocation4], 0  ;;  %s727_s30 = smov [#allocation5]   ;;  %s633_s13 = scalar_lea.hbm %s870_s3, 2048 }
   0x3   :  { %s36_s10 = sshll.u32 %s727_s30, 4  ;;  %p634_p0 = scmp.ne.s32.totalorder %s870_s3, %s633_s13  ;;  %s37_s10 = int_to_ptr.vmem [resolvable:$true] %s36_s10 }
   0x4   :  { %p637_p1 = scmp.lt.u32.totalorder %s633_s13, %s870_s3 }
   0x6   :  { %p639_p2 = pnand %p637_p1, %p634_p0 }
   0x8   :  { %642 = shalt.err (!%p639_p2)
}
   0x9   :  { %s643_s18 = scalar_lea.vmem %s37_s10, 2048  ;;  %p648_p4 = scmp.lt.s32.totalorder %s37_s10, %s37_s10 }
   0xa   :  { %p644_p3 = scmp.ne.s32.totalorder %s37_s10, %s643_s18  ;;  %p649_p5 = scmp.lt.s32.totalorder %s643_s18, %s643_s18 }
   0xc   :  { %p650_p6 = por %p649_p5, %p648_p4 }
   0xe   :  { %p651_p7 = pnand %p650_p6, %p644_p3 }
  0x10   :  { %654 = shalt.err (!%p651_p7)
}
  0x11   :  { %s728_s19 = smov 64   ;;  %s729_s20 = smov 4  }
  0x12   :  { %42 = dma.hbm_to_vmem [thread:$0]  %s870_s3, 2048, %s37_s10, [#allocation6], %s728_s19, %s728_s19, %s729_s20  }
  0x13   :  { %s730_s23 = smov [#allocation2]   ;;  %s731_s25 = smov [#allocation7]  }
  0x14   :  { %s23_s24 = sshll.u32 %s730_s23, 4  ;;  %s54_s26 = sshll.u32 %s731_s25, 4  ;;  %s24_s24 = int_to_ptr.vmem [resolvable:$true] %s23_s24  ;;  %s55_s26 = int_to_ptr.vmem [resolvable:$true] %s54_s26 }
  0x15   :  { %s655_s29 = scalar_lea.hbm %s867_s0, 128 }
  0x16   :  { %p656_p8 = scmp.ne.s32.totalorder %s867_s0, %s655_s29  ;;  %p659_p9 = scmp.lt.u32.totalorder %s655_s29, %s867_s0 }
  0x18   :  { %p661_p10 = pnand %p659_p9, %p656_p8 }
  0x1a   :  { %664 = shalt.err (!%p661_p10)
}
  0x1b   :  { %s665_s3 = scalar_lea.vmem %s24_s24, 128  ;;  %p670_p12 = scmp.lt.s32.totalorder %s24_s24, %s24_s24 }
  0x1c   :  { %p666_p11 = scmp.ne.s32.totalorder %s24_s24, %s665_s3  ;;  %p671_p13 = scmp.lt.s32.totalorder %s665_s3, %s665_s3 }
  0x1e   :  { %p672_p0 = por %p671_p13, %p670_p12 }
  0x20   :  { %p673_p1 = pnand %p672_p0, %p666_p11 }
  0x22   :  { %676 = shalt.err (!%p673_p1)
}
  0x23   :  { %26 = dma.hbm_to_vmem [thread:$0]  %s867_s0, 128, %s24_s24, [#allocation3]  }
  0x24   :  { %s677_s17 = scalar_lea.hbm %s874_s7, 2048 }
  0x25   :  { %p678_p2 = scmp.ne.s32.totalorder %s874_s7, %s677_s17  ;;  %p681_p3 = scmp.lt.u32.totalorder %s677_s17, %s874_s7 }
  0x27   :  { %p683_p4 = pnand %p681_p3, %p678_p2 }
  0x29   :  { %686 = shalt.err (!%p683_p4)
}
  0x2a   :  { %s687_s25 = scalar_lea.vmem %s55_s26, 2048  ;;  %p692_p6 = scmp.lt.s32.totalorder %s55_s26, %s55_s26 }
  0x2b   :  { %p688_p5 = scmp.ne.s32.totalorder %s55_s26, %s687_s25  ;;  %p693_p7 = scmp.lt.s32.totalorder %s687_s25, %s687_s25 }
  0x2d   :  { %p694_p8 = por %p693_p7, %p692_p6 }
  0x2f   :  { %p695_p9 = pnand %p694_p8, %p688_p5 }
  0x31   :  { %698 = shalt.err (!%p695_p9)
}
  0x32   :  { %60 = dma.hbm_to_vmem [thread:$0]  %s874_s7, 2048, %s55_s26, [#allocation6], %s728_s19, %s728_s19, %s729_s20  }
  0x33   :  { %721 = dma.done.wait [#allocation3], 128  }
  0x34   :  { %722 = vsyncadd [#allocation3], 4294967168 }
  0x35   :  { %723 = dma.done.wait [#allocation6], 4096  }
  0x36   :  { %724 = vsyncadd [#allocation6], 4294963200  ;;  %v601_v0 = vld [vmem:[#allocation5 + $0x40] sm:$0xff]   ;;  %v603_v2 = vld [vmem:[#allocation5 + $0x48] sm:$0xff]   ;;  %v76_v5 = vlaneseq }
  0x37   :  { %v602_v1 = vld [vmem:[#allocation5] sm:$0xff]   ;;  %551 = vmatprep.subr.bf16.mxu0 %v601_v0  ;;  %v604_v3 = vld [vmem:[#allocation5 + $0x8] sm:$0xff]   ;;  %v605_v4 = vld [vmem:[#allocation5 + $0x50] sm:$0xff]  }
  0x38   :  { %552 = vmatpush3.bf16.msra.mxu0 %v602_v1  ;;  %v606_v6 = vld [vmem:[#allocation5 + $0x10] sm:$0xff]   ;;  %v607_v7 = vld [vmem:[#allocation5 + $0x58] sm:$0xff]   ;;  %v77_v8 = vshrl.u32 %v76_v5, 7  ;;  %v609_v10 = vld [vmem:[#allocation5 + $0x60] sm:$0xff]  }
  0x39   :  { %553 = vmatprep.subr.bf16.mxu0 %v603_v2  ;;  %v608_v9 = vld [vmem:[#allocation5 + $0x18] sm:$0xff]   ;;  %v610_v13 = vld [vmem:[#allocation5 + $0x20] sm:$0xff]   ;;  %v611_v14 = vld [vmem:[#allocation5 + $0x68] sm:$0xff]  }
  0x3a   :  { %v825_v11 = vsub.s32 0, %v77_v8  ;;  %v827_v12 = vsub.s32 1, %v77_v8  ;;  %v73_v15 = vld [vmem:[#allocation2] sm:$0xff]  ;;  %v612_v18 = vld [vmem:[#allocation5 + $0x28] sm:$0xff]   ;;  %v617_v23 = vld [vmem:[#allocation7 + $0x40] sm:$0xff]  }
  0x3b   :  { %v74_v16 = vld [vmem:[%s868_s1] sm:$0x3]  ;;  %v613_v24 = vld [vmem:[#allocation5 + $0x70] sm:$0xff]   ;;  %v618_v25 = vld [vmem:[#allocation7] sm:$0xff]   ;;  %573 = vmatprep.subr.bf16.mxu1 %v617_v23 }
  0x3c   :  { %554 = vmatpush3.bf16.msra.mxu0 %v604_v3  ;;  %v90_v17 = vld [vmem:[%s869_s2] sm:$0x3]  ;;  %v79_v19 = vrot.slane %v74_v16, %v825_v11  ;;  %v83_v20 = vrot.slane %v74_v16, %v827_v12  ;;  %v619_v30 = vld [vmem:[#allocation7 + $0x48] sm:$0xff]   ;;  %v614_v32 = vld [vmem:[#allocation5 + $0x30] sm:$0xff]   ;;  %574 = vmatpush3.bf16.msra.mxu1 %v618_v25 }
  0x3d   :  { %555 = vmatprep.subr.bf16.mxu0 %v605_v4  ;;  %v95_v21 = vrot.slane %v90_v17, %v825_v11  ;;  %v99_v22 = vrot.slane %v90_v17, %v827_v12  ;;  %v620_v31 = vld [vmem:[#allocation7 + $0x8] sm:$0xff]   ;;  %575 = vmatprep.subr.bf16.mxu1 %v619_v30  ;;  %v621_v37 = vld [vmem:[#allocation7 + $0x50] sm:$0xff]   ;;  %v615_v38 = vld [vmem:[#allocation5 + $0x78] sm:$0xff]  }
  0x3e   :  { %v87_v26 = vsub.f32 %v73_v15, %v83_v20  ;;  %v86_v28 = vsub.f32 %v73_v15, %v79_v19  ;;  %v622_v41 = vld [vmem:[#allocation7 + $0x10] sm:$0xff]   ;;  %v616_v42 = vld [vmem:[#allocation5 + $0x38] sm:$0xff]   ;;  %v625_v49 = vld [vmem:[#allocation7 + $0x60] sm:$0xff]  }
  0x3f   :  { %v103_v27 = vsub.f32 %v99_v22, %v73_v15  ;;  %v102_v29 = vsub.f32 %v95_v21, %v73_v15  ;;  %v623_v44 = vld [vmem:[#allocation7 + $0x58] sm:$0xff]   ;;  %v626_v50 = vld [vmem:[#allocation7 + $0x20] sm:$0xff]   ;;  %v627_v51 = vld [vmem:[#allocation7 + $0x68] sm:$0xff]  }
  0x40   :  { %556 = vmatpush3.bf16.msra.mxu0 %v606_v6  ;;  %v89_v33 = vmax.f32 %v87_v26, 0.0  ;;  %v88_v35 = vmax.f32 %v86_v28, 0.0  ;;  %576 = vmatpush3.bf16.msra.mxu1 %v620_v31  ;;  %v624_v47 = vld [vmem:[#allocation7 + $0x18] sm:$0xff]   ;;  %v628_v52 = vld [vmem:[#allocation7 + $0x28] sm:$0xff]   ;;  %v629_v53 = vld [vmem:[#allocation7 + $0x70] sm:$0xff]  }
  0x41   :  { %557 = vmatprep.subr.bf16.mxu0 %v607_v7  ;;  %v105_v34 = vmax.f32 %v103_v27, 0.0  ;;  %v104_v36 = vmax.f32 %v102_v29, 0.0  ;;  %577 = vmatprep.subr.bf16.mxu1 %v621_v37  ;;  %v630_v54 = vld [vmem:[#allocation7 + $0x30] sm:$0xff]   ;;  %v631_v55 = vld [vmem:[#allocation7 + $0x78] sm:$0xff]  }
  0x42   :  { %v632_v56 = vld [vmem:[#allocation7 + $0x38] sm:$0xff]  }
  0x43   :  { %v107_v39 = vmul.f32 %v105_v34, %v89_v33  ;;  %v106_v40 = vmul.f32 %v104_v36, %v88_v35  ;;  %v287_v57 = vld [vmem:[%s872_s5] sm:$0x3] }
  0x44   :  { %558 = vmatpush3.bf16.msra.mxu0 %v608_v9  ;;  %578 = vmatpush3.bf16.msra.mxu1 %v622_v41  ;;  %v303_v58 = vld [vmem:[%s873_s6] sm:$0x3]  ;;  %v292_v62 = vrot.slane %v287_v57, %v825_v11  ;;  %v296_v1 = vrot.slane %v287_v57, %v827_v12  ;;  %s732_s6 = smov [#allocation8]  }
  0x45   :  { %559 = vmatprep.subr.bf16.mxu0 %v609_v10  ;;  %v109_v43 = vmul.f32 %v107_v39, %v107_v39  ;;  %v108_v45 = vmul.f32 %v106_v40, %v106_v40  ;;  %579 = vmatprep.subr.bf16.mxu1 %v623_v44  ;;  %v517_v60 = vld [vmem:[%s871_s4] ss:$0 sm:$0xff]  ;;  %v308_v2 = vrot.slane %v303_v58, %v825_v11  ;;  %s507_s11 = sshll.u32 %s732_s6, 4  ;;  %s508_s11 = int_to_ptr.vmem [resolvable:$true] %s507_s11 }
  0x46   :  { %v312_v3 = vrot.slane %v303_v58, %v827_v12  ;;  %v534_v12 = vld [vmem:[%s875_s8] ss:$0 sm:$0xff]  ;;  %s699_s12 = scalar_lea.vmem %s508_s11, 128  ;;  %p704_p11 = scmp.lt.s32.totalorder %s508_s11, %s508_s11 }
  0x47   :  { %v111_v46 = vpack.c.bf16 %v109_v43, %v109_v43  ;;  %v110_v48 = vpack.c.bf16 %v108_v45, %v108_v45  ;;  %p700_p10 = scmp.ne.s32.totalorder %s508_s11, %s699_s12  ;;  %p705_p12 = scmp.lt.s32.totalorder %s699_s12, %s699_s12 }
  0x48   :  { %560 = vmatpush3.bf16.msra.mxu0 %v610_v13  ;;  %580 = vmatpush3.bf16.msra.mxu1 %v624_v47 }
  0x49   :  { %561 = vmatprep.subr.bf16.mxu0 %v611_v14  ;;  %279 = vmatprep.mubr.bf16.mxu0 %v111_v46  ;;  %p706_p13 = por %p705_p12, %p704_p11 }
  0x4a   :  { %581 = vmatprep.subr.bf16.mxu1 %v625_v49 }
  0x4b   :  { %p707_p0 = pnand %p706_p13, %p700_p10 }
  0x4c   :  { %562 = vmatpush3.bf16.msra.mxu0 %v612_v18  ;;  %582 = vmatpush3.bf16.msra.mxu1 %v626_v50 }
  0x4d   :  { %563 = vmatprep.subr.bf16.mxu0 %v613_v24  ;;  %583 = vmatprep.subr.bf16.mxu1 %v627_v51 }
  0x50   :  { %564 = vmatpush3.bf16.msra.mxu0 %v614_v32  ;;  %584 = vmatpush3.bf16.msra.mxu1 %v628_v52 }
  0x51   :  { %565 = vmatprep.subr.bf16.mxu0 %v615_v38  ;;  %585 = vmatprep.subr.bf16.mxu1 %v629_v53 }
  0x54   :  { %566 = vmatpush3.bf16.msra.mxu0 %v616_v42  ;;  %586 = vmatpush3.bf16.msra.mxu1 %v630_v54 }
  0x55   :  { %587 = vmatprep.subr.bf16.mxu1 %v631_v55 }
  0x57   :  { %280 = vmatmul.mubr.bf16.vlgmr.msra.gmra.mrb[0].mxu0 %v110_v48 }
  0x58   :  { %588 = vmatpush3.bf16.msra.mxu1 %v632_v56 }
 0x12a   :  { %v567_v59 = vpop.f32.mrb[0].mxu0 }
 0x12b   :  { %v568_v61 = vpop.f32.mrb[1].mxu0 }
 0x12c   :  { %v569_v63 = vadd.f32 %v568_v61, %v567_v59  ;;  %v570_v0 = vpop.f32.mrb[2].mxu0 }
 0x12d   :  { %v571_v4 = vpop.f32.mrb[3].mxu0 }
 0x12e   :  { %v282_v5 = vadd.f32 %v569_v63, %v517_v60 }
 0x130   :  { %v300_v6 = vsub.f32 %v282_v5, %v296_v1  ;;  %v316_v7 = vsub.f32 %v312_v3, %v282_v5  ;;  %v299_v8 = vsub.f32 %v282_v5, %v292_v62  ;;  %v315_v9 = vsub.f32 %v308_v2, %v282_v5 }
 0x132   :  { %v302_v10 = vmax.f32 %v300_v6, 0.0  ;;  %v318_v13 = vmax.f32 %v316_v7, 0.0  ;;  %v301_v14 = vmax.f32 %v299_v8, 0.0  ;;  %v317_v15 = vmax.f32 %v315_v9, 0.0 }
 0x134   :  { %v320_v16 = vmul.f32 %v318_v13, %v302_v10  ;;  %v319_v17 = vmul.f32 %v317_v15, %v301_v14 }
 0x136   :  { %v322_v18 = vmul.f32 %v320_v16, %v320_v16  ;;  %v321_v19 = vmul.f32 %v319_v17, %v319_v17 }
 0x138   :  { %v324_v20 = vpack.c.bf16 %v322_v18, %v322_v18  ;;  %v323_v21 = vpack.c.bf16 %v321_v19, %v321_v19 }
 0x13a   :  { %492 = vmatprep.mubr.bf16.mxu1 %v324_v20 }
 0x13b   :  { %493 = vmatmul.mubr.bf16.vlgmr.msra.gmra.mrb[0].mxu1 %v323_v21 }
 0x20e   :  { %v589_v11 = vpop.f32.mrb[0].mxu1 }
 0x20f   :  { %v590_v22 = vpop.f32.mrb[1].mxu1 }
 0x210   :  { %v591_v23 = vadd.f32 %v590_v22, %v589_v11  ;;  %v592_v24 = vpop.f32.mrb[2].mxu1 }
 0x211   :  { %v593_v25 = vpop.f32.mrb[3].mxu1 }
 0x212   :  { %v495_v26 = vadd.f32 %v591_v23, %v534_v12 }
 0x214   :  { %500 = vst [vmem:[#allocation8] sm:$0xff] %v495_v26 }
 0x215   :  { %710 = shalt.err (!%p707_p0)
}
 0x216   :  { %s711_s8 = scalar_lea.hbm %s876_s9, 128 }
 0x217   :  { %p712_p1 = scmp.ne.s32.totalorder %s876_s9, %s711_s8  ;;  %p715_p2 = scmp.lt.u32.totalorder %s711_s8, %s876_s9 }
 0x219   :  { %p717_p3 = pnand %p715_p2, %p712_p1 }
 0x21b   :  { %720 = shalt.err (!%p717_p3)
}
 0x21c   :  { %510 = dma.vmem_to_hbm [thread:$0]  %s508_s11, 128, %s876_s9, [#allocation4]  }
 0x21d   :  { %725 = dma.done.wait [#allocation4], 128  }
 0x21e   :  { %726 = vsyncadd [#allocation4], 4294967168 }
 0x21f   :  { %514 = vsyncpa [#allocation3], 1 }
 0x220   :  { %515 = vsyncpa [#allocation6], 1 }
 0x221   :  { %516 = vsyncpa [#allocation4], 1 }

// kernel: tpu_custom_call.1
= control target key start
LH: loop header
LB: loop body
LE: loop exit
PB: predicated region body
PF: predicated region fallthrough
CT: control target
= control target key end

     0   :  { %14 = vsyncpa [#allocation3], 0  ;;  %s867_s0 = inlined_call_operand.hbm [shape: f32[8,128], index: 0, kind: input, shape index: {}]   ;;  %s868_s1 = inlined_call_operand.vmem [shape: f32[1,256], index: 1, kind: input, shape index: {}]   ;;  %s869_s2 = inlined_call_operand.vmem [shape: f32[1,256], index: 2, kind: input, shape index: {}]   ;;  %s870_s3 = inlined_call_operand.hbm [shape: bf16[256,128], index: 3, kind: input, shape index: {}]   ;;  %s871_s4 = inlined_call_operand.vmem [shape: f32[1,128], index: 4, kind: input, shape index: {}]   ;;  %s872_s5 = inlined_call_operand.vmem [shape: f32[1,256], index: 5, kind: input, shape index: {}]   ;;  %s873_s6 = inlined_call_operand.vmem [shape: f32[1,256], index: 6, kind: input, shape index: {}]   ;;  %s874_s7 = inlined_call_operand.hbm [shape: bf16[256,128], index: 7, kind: input, shape index: {}]   ;;  %s875_s8 = inlined_call_operand.vmem [shape: f32[1,128], index: 8, kind: input, shape index: {}]   ;;  %s876_s9 = inlined_call_operand.hbm [shape: f32[8,128], index: 9, kind: output, shape index: {}]  }
   0x1   :  { %15 = vsyncpa [#allocation6], 0 }
   0x2   :  { %16 = vsyncpa [#allocation4], 0  ;;  %s727_s30 = smov [#allocation5]   ;;  %s633_s13 = scalar_lea.hbm %s870_s3, 2048 }
   0x3   :  { %s36_s10 = sshll.u32 %s727_s30, 4  ;;  %p634_p0 = scmp.ne.s32.totalorder %s870_s3, %s633_s13  ;;  %s37_s10 = int_to_ptr.vmem [resolvable:$true] %s36_s10 }
   0x4   :  { %p637_p1 = scmp.lt.u32.totalorder %s633_s13, %s870_s3 }
   0x6   :  { %p639_p2 = pnand %p637_p1, %p634_p0 }
   0x8   :  { %642 = shalt.err (!%p639_p2)
}
   0x9   :  { %s643_s18 = scalar_lea.vmem %s37_s10, 2048  ;;  %p648_p4 = scmp.lt.s32.totalorder %s37_s10, %s37_s10 }
   0xa   :  { %p644_p3 = scmp.ne.s32.totalorder %s37_s10, %s643_s18  ;;  %p649_p5 = scmp.lt.s32.totalorder %s643_s18, %s643_s18 }
   0xc   :  { %p650_p6 = por %p649_p5, %p648_p4 }
   0xe   :  { %p651_p7 = pnand %p650_p6, %p644_p3 }
  0x10   :  { %654 = shalt.err (!%p651_p7)
}
  0x11   :  { %s728_s19 = smov 64   ;;  %s729_s20 = smov 4  }
  0x12   :  { %42 = dma.hbm_to_vmem [thread:$0]  %s870_s3, 2048, %s37_s10, [#allocation6], %s728_s19, %s728_s19, %s729_s20  }
  0x13   :  { %s730_s23 = smov [#allocation2]   ;;  %s731_s25 = smov [#allocation7]  }
  0x14   :  { %s23_s24 = sshll.u32 %s730_s23, 4  ;;  %s54_s26 = sshll.u32 %s731_s25, 4  ;;  %s24_s24 = int_to_ptr.vmem [resolvable:$true] %s23_s24  ;;  %s55_s26 = int_to_ptr.vmem [resolvable:$true] %s54_s26 }
  0x15   :  { %s655_s29 = scalar_lea.hbm %s867_s0, 128 }
  0x16   :  { %p656_p8 = scmp.ne.s32.totalorder %s867_s0, %s655_s29  ;;  %p659_p9 = scmp.lt.u32.totalorder %s655_s29, %s867_s0 }
  0x18   :  { %p661_p10 = pnand %p659_p9, %p656_p8 }
  0x1a   :  { %664 = shalt.err (!%p661_p10)
}
  0x1b   :  { %s665_s3 = scalar_lea.vmem %s24_s24, 128  ;;  %p670_p12 = scmp.lt.s32.totalorder %s24_s24, %s24_s24 }
  0x1c   :  { %p666_p11 = scmp.ne.s32.totalorder %s24_s24, %s665_s3  ;;  %p671_p13 = scmp.lt.s32.totalorder %s665_s3, %s665_s3 }
  0x1e   :  { %p672_p0 = por %p671_p13, %p670_p12 }
  0x20   :  { %p673_p1 = pnand %p672_p0, %p666_p11 }
  0x22   :  { %676 = shalt.err (!%p673_p1)
}
  0x23   :  { %26 = dma.hbm_to_vmem [thread:$0]  %s867_s0, 128, %s24_s24, [#allocation3]  }
  0x24   :  { %s677_s17 = scalar_lea.hbm %s874_s7, 2048 }
  0x25   :  { %p678_p2 = scmp.ne.s32.totalorder %s874_s7, %s677_s17  ;;  %p681_p3 = scmp.lt.u32.totalorder %s677_s17, %s874_s7 }
  0x27   :  { %p683_p4 = pnand %p681_p3, %p678_p2 }
  0x29   :  { %686 = shalt.err (!%p683_p4)
}
  0x2a   :  { %s687_s25 = scalar_lea.vmem %s55_s26, 2048  ;;  %p692_p6 = scmp.lt.s32.totalorder %s55_s26, %s55_s26 }
  0x2b   :  { %p688_p5 = scmp.ne.s32.totalorder %s55_s26, %s687_s25  ;;  %p693_p7 = scmp.lt.s32.totalorder %s687_s25, %s687_s25 }
  0x2d   :  { %p694_p8 = por %p693_p7, %p692_p6 }
  0x2f   :  { %p695_p9 = pnand %p694_p8, %p688_p5 }
  0x31   :  { %698 = shalt.err (!%p695_p9)
}
  0x32   :  { %60 = dma.hbm_to_vmem [thread:$0]  %s874_s7, 2048, %s55_s26, [#allocation6], %s728_s19, %s728_s19, %s729_s20  }
  0x33   :  { %721 = dma.done.wait [#allocation3], 128  }
  0x34   :  { %722 = vsyncadd [#allocation3], 4294967168 }
  0x35   :  { %723 = dma.done.wait [#allocation6], 4096  }
  0x36   :  { %724 = vsyncadd [#allocation6], 4294963200  ;;  %v601_v0 = vld [vmem:[#allocation5 + $0x40] sm:$0xff]   ;;  %v603_v2 = vld [vmem:[#allocation5 + $0x48] sm:$0xff]   ;;  %v76_v5 = vlaneseq }
  0x37   :  { %v602_v1 = vld [vmem:[#allocation5] sm:$0xff]   ;;  %551 = vmatprep.subr.bf16.mxu0 %v601_v0  ;;  %v604_v3 = vld [vmem:[#allocation5 + $0x8] sm:$0xff]   ;;  %v605_v4 = vld [vmem:[#allocation5 + $0x50] sm:$0xff]  }
  0x38   :  { %552 = vmatpush3.bf16.msra.mxu0 %v602_v1  ;;  %v606_v6 = vld [vmem:[#allocation5 + $0x10] sm:$0xff]   ;;  %v607_v7 = vld [vmem:[#allocation5 + $0x58] sm:$0xff]   ;;  %v77_v8 = vshrl.u32 %v76_v5, 7  ;;  %v609_v10 = vld [vmem:[#allocation5 + $0x60] sm:$0xff]  }
  0x39   :  { %553 = vmatprep.subr.bf16.mxu0 %v603_v2  ;;  %v608_v9 = vld [vmem:[#allocation5 + $0x18] sm:$0xff]   ;;  %v610_v13 = vld [vmem:[#allocation5 + $0x20] sm:$0xff]   ;;  %v611_v14 = vld [vmem:[#allocation5 + $0x68] sm:$0xff]  }
  0x3a   :  { %v825_v11 = vsub.s32 0, %v77_v8  ;;  %v827_v12 = vsub.s32 1, %v77_v8  ;;  %v73_v15 = vld [vmem:[#allocation2] sm:$0xff]  ;;  %v612_v18 = vld [vmem:[#allocation5 + $0x28] sm:$0xff]   ;;  %v617_v23 = vld [vmem:[#allocation7 + $0x40] sm:$0xff]  }
  0x3b   :  { %v74_v16 = vld [vmem:[%s868_s1] sm:$0x3]  ;;  %v613_v24 = vld [vmem:[#allocation5 + $0x70] sm:$0xff]   ;;  %v618_v25 = vld [vmem:[#allocation7] sm:$0xff]   ;;  %573 = vmatprep.subr.bf16.mxu1 %v617_v23 }
  0x3c   :  { %554 = vmatpush3.bf16.msra.mxu0 %v604_v3  ;;  %v90_v17 = vld [vmem:[%s869_s2] sm:$0x3]  ;;  %v79_v19 = vrot.slane %v74_v16, %v825_v11  ;;  %v83_v20 = vrot.slane %v74_v16, %v827_v12  ;;  %v619_v30 = vld [vmem:[#allocation7 + $0x48] sm:$0xff]   ;;  %v614_v32 = vld [vmem:[#allocation5 + $0x30] sm:$0xff]   ;;  %574 = vmatpush3.bf16.msra.mxu1 %v618_v25 }
  0x3d   :  { %555 = vmatprep.subr.bf16.mxu0 %v605_v4  ;;  %v95_v21 = vrot.slane %v90_v17, %v825_v11  ;;  %v99_v22 = vrot.slane %v90_v17, %v827_v12  ;;  %v620_v31 = vld [vmem:[#allocation7 + $0x8] sm:$0xff]   ;;  %575 = vmatprep.subr.bf16.mxu1 %v619_v30  ;;  %v621_v37 = vld [vmem:[#allocation7 + $0x50] sm:$0xff]   ;;  %v615_v38 = vld [vmem:[#allocation5 + $0x78] sm:$0xff]  }
  0x3e   :  { %v87_v26 = vsub.f32 %v73_v15, %v83_v20  ;;  %v86_v28 = vsub.f32 %v73_v15, %v79_v19  ;;  %v622_v41 = vld [vmem:[#allocation7 + $0x10] sm:$0xff]   ;;  %v616_v42 = vld [vmem:[#allocation5 + $0x38] sm:$0xff]   ;;  %v625_v49 = vld [vmem:[#allocation7 + $0x60] sm:$0xff]  }
  0x3f   :  { %v103_v27 = vsub.f32 %v99_v22, %v73_v15  ;;  %v102_v29 = vsub.f32 %v95_v21, %v73_v15  ;;  %v623_v44 = vld [vmem:[#allocation7 + $0x58] sm:$0xff]   ;;  %v626_v50 = vld [vmem:[#allocation7 + $0x20] sm:$0xff]   ;;  %v627_v51 = vld [vmem:[#allocation7 + $0x68] sm:$0xff]  }
  0x40   :  { %556 = vmatpush3.bf16.msra.mxu0 %v606_v6  ;;  %v89_v33 = vmax.f32 %v87_v26, 0.0  ;;  %v88_v35 = vmax.f32 %v86_v28, 0.0  ;;  %576 = vmatpush3.bf16.msra.mxu1 %v620_v31  ;;  %v624_v47 = vld [vmem:[#allocation7 + $0x18] sm:$0xff]   ;;  %v628_v52 = vld [vmem:[#allocation7 + $0x28] sm:$0xff]   ;;  %v629_v53 = vld [vmem:[#allocation7 + $0x70] sm:$0xff]  }
  0x41   :  { %557 = vmatprep.subr.bf16.mxu0 %v607_v7  ;;  %v105_v34 = vmax.f32 %v103_v27, 0.0  ;;  %v104_v36 = vmax.f32 %v102_v29, 0.0  ;;  %577 = vmatprep.subr.bf16.mxu1 %v621_v37  ;;  %v630_v54 = vld [vmem:[#allocation7 + $0x30] sm:$0xff]   ;;  %v631_v55 = vld [vmem:[#allocation7 + $0x78] sm:$0xff]  }
  0x42   :  { %v632_v56 = vld [vmem:[#allocation7 + $0x38] sm:$0xff]  }
  0x43   :  { %v107_v39 = vmul.f32 %v105_v34, %v89_v33  ;;  %v106_v40 = vmul.f32 %v104_v36, %v88_v35  ;;  %v287_v57 = vld [vmem:[%s872_s5] sm:$0x3] }
  0x44   :  { %558 = vmatpush3.bf16.msra.mxu0 %v608_v9  ;;  %578 = vmatpush3.bf16.msra.mxu1 %v622_v41  ;;  %v303_v58 = vld [vmem:[%s873_s6] sm:$0x3]  ;;  %v292_v62 = vrot.slane %v287_v57, %v825_v11  ;;  %v296_v1 = vrot.slane %v287_v57, %v827_v12  ;;  %s732_s6 = smov [#allocation8]  }
  0x45   :  { %559 = vmatprep.subr.bf16.mxu0 %v609_v10  ;;  %v109_v43 = vmul.f32 %v107_v39, %v107_v39  ;;  %v108_v45 = vmul.f32 %v106_v40, %v106_v40  ;;  %579 = vmatprep.subr.bf16.mxu1 %v623_v44  ;;  %v517_v60 = vld [vmem:[%s871_s4] ss:$0 sm:$0xff]  ;;  %v308_v2 = vrot.slane %v303_v58, %v825_v11  ;;  %s507_s11 = sshll.u32 %s732_s6, 4  ;;  %s508_s11 = int_to_ptr.vmem [resolvable:$true] %s507_s11 }
  0x46   :  { %v312_v3 = vrot.slane %v303_v58, %v827_v12  ;;  %v534_v12 = vld [vmem:[%s875_s8] ss:$0 sm:$0xff]  ;;  %s699_s12 = scalar_lea.vmem %s508_s11, 128  ;;  %p704_p11 = scmp.lt.s32.totalorder %s508_s11, %s508_s11 }
  0x47   :  { %v111_v46 = vpack.c.bf16 %v109_v43, %v109_v43  ;;  %v110_v48 = vpack.c.bf16 %v108_v45, %v108_v45  ;;  %p700_p10 = scmp.ne.s32.totalorder %s508_s11, %s699_s12  ;;  %p705_p12 = scmp.lt.s32.totalorder %s699_s12, %s699_s12 }
  0x48   :  { %560 = vmatpush3.bf16.msra.mxu0 %v610_v13  ;;  %580 = vmatpush3.bf16.msra.mxu1 %v624_v47 }
  0x49   :  { %561 = vmatprep.subr.bf16.mxu0 %v611_v14  ;;  %279 = vmatprep.mubr.bf16.mxu0 %v111_v46  ;;  %p706_p13 = por %p705_p12, %p704_p11 }
  0x4a   :  { %581 = vmatprep.subr.bf16.mxu1 %v625_v49 }
  0x4b   :  { %p707_p0 = pnand %p706_p13, %p700_p10 }
  0x4c   :  { %562 = vmatpush3.bf16.msra.mxu0 %v612_v18  ;;  %582 = vmatpush3.bf16.msra.mxu1 %v626_v50 }
  0x4d   :  { %563 = vmatprep.subr.bf16.mxu0 %v613_v24  ;;  %583 = vmatprep.subr.bf16.mxu1 %v627_v51 }
  0x50   :  { %564 = vmatpush3.bf16.msra.mxu0 %v614_v32  ;;  %584 = vmatpush3.bf16.msra.mxu1 %v628_v52 }
  0x51   :  { %565 = vmatprep.subr.bf16.mxu0 %v615_v38  ;;  %585 = vmatprep.subr.bf16.mxu1 %v629_v53 }
  0x54   :  { %566 = vmatpush3.bf16.msra.mxu0 %v616_v42  ;;  %586 = vmatpush3.bf16.msra.mxu1 %v630_v54 }
  0x55   :  { %587 = vmatprep.subr.bf16.mxu1 %v631_v55 }
  0x57   :  { %280 = vmatmul.mubr.bf16.vlgmr.msra.gmra.mrb[0].mxu0 %v110_v48 }
  0x58   :  { %588 = vmatpush3.bf16.msra.mxu1 %v632_v56 }
 0x12a   :  { %v567_v59 = vpop.f32.mrb[0].mxu0 }
 0x12b   :  { %v568_v61 = vpop.f32.mrb[1].mxu0 }
 0x12c   :  { %v569_v63 = vadd.f32 %v568_v61, %v567_v59  ;;  %v570_v0 = vpop.f32.mrb[2].mxu0 }
 0x12d   :  { %v571_v4 = vpop.f32.mrb[3].mxu0 }
 0x12e   :  { %v282_v5 = vadd.f32 %v569_v63, %v517_v60 }
 0x130   :  { %v300_v6 = vsub.f32 %v282_v5, %v296_v1  ;;  %v316_v7 = vsub.f32 %v312_v3, %v282_v5  ;;  %v299_v8 = vsub.f32 %v282_v5, %v292_v62  ;;  %v315_v9 = vsub.f32 %v308_v2, %v282_v5 }
 0x132   :  { %v302_v10 = vmax.f32 %v300_v6, 0.0  ;;  %v318_v13 = vmax.f32 %v316_v7, 0.0  ;;  %v301_v14 = vmax.f32 %v299_v8, 0.0  ;;  %v317_v15 = vmax.f32 %v315_v9, 0.0 }
 0x134   :  { %v320_v16 = vmul.f32 %v318_v13, %v302_v10  ;;  %v319_v17 = vmul.f32 %v317_v15, %v301_v14 }
 0x136   :  { %v322_v18 = vmul.f32 %v320_v16, %v320_v16  ;;  %v321_v19 = vmul.f32 %v319_v17, %v319_v17 }
 0x138   :  { %v324_v20 = vpack.c.bf16 %v322_v18, %v322_v18  ;;  %v323_v21 = vpack.c.bf16 %v321_v19, %v321_v19 }
 0x13a   :  { %492 = vmatprep.mubr.bf16.mxu1 %v324_v20 }
 0x13b   :  { %493 = vmatmul.mubr.bf16.vlgmr.msra.gmra.mrb[0].mxu1 %v323_v21 }
 0x20e   :  { %v589_v11 = vpop.f32.mrb[0].mxu1 }
 0x20f   :  { %v590_v22 = vpop.f32.mrb[1].mxu1 }
 0x210   :  { %v591_v23 = vadd.f32 %v590_v22, %v589_v11  ;;  %v592_v24 = vpop.f32.mrb[2].mxu1 }
 0x211   :  { %v593_v25 = vpop.f32.mrb[3].mxu1 }
 0x212   :  { %v495_v26 = vadd.f32 %v591_v23, %v534_v12 }
 0x214   :  { %500 = vst [vmem:[#allocation8] sm:$0xff] %v495_v26 }
 0x215   :  { %710 = shalt.err (!%p707_p0)
}
 0x216   :  { %s711_s8 = scalar_lea.hbm %s876_s9, 128 }
 0x217   :  { %p712_p1 = scmp.ne.s32.totalorder %s876_s9, %s711_s8  ;;  %p715_p2 = scmp.lt.u32.totalorder %s711_s8, %s876_s9 }
 0x219   :  { %p717_p3 = pnand %p715_p2, %p712_p1 }
 0x21b   :  { %720 = shalt.err (!%p717_p3)
}
 0x21c   :  { %510 = dma.vmem_to_hbm [thread:$0]  %s508_s11, 128, %s876_s9, [#allocation4]  }
 0x21d   :  { %725 = dma.done.wait [#allocation4], 128  }
 0x21e   :  { %726 = vsyncadd [#allocation4], 4294967168 }
 0x21f   :  { %514 = vsyncpa [#allocation3], 1 }
 0x220   :  { %515 = vsyncpa [#allocation6], 1 }
 0x221   :  { %516 = vsyncpa [#allocation4], 1 }

</bundles_post_ra>
